<compile_context>
chip_gen: v7x
topology: tpu7x:2x2x1
jax: 0.10.0
libtpu: 0.0.40
codegen_flags: <defaults>
</compile_context>

<pallas_src>
import math

import jax
import jax.numpy as jnp
from jax.experimental import pallas as pl
from jax.experimental.pallas import tpu as pltpu

OFFSET = 1.0            # DurationPredictorLoss(offset=1.0)
LANES = 512             # lane-dense width (multiple of 128)
MAX_ROWS_PER_TILE = 512  # 512 x 512 x 4 B = 1 MiB per input block


def _dp_loss_kernel(out_ref, tgt_ref, sse_ref, acc_ref):
    """Accumulate squared error of (outputs - log(targets + offset)).

    acc_ref : VMEM (rows_per_tile, LANES) f32 positional partial sums,
              resident across the inner (reduction) grid axis.
    sse_ref : SMEM (1, 1) per-split scalar sum, written once on the last step.
    """
    i = pl.program_id(1)

    @pl.when(i == 0)
    def _():
        acc_ref[...] = jnp.zeros_like(acc_ref)

    tgt = jnp.log(tgt_ref[...] + OFFSET)            # EUP
    diff = out_ref[...] - tgt                       # VPU
    acc_ref[...] += diff * diff                     # VPU elementwise accumulate

    @pl.when(i == pl.num_programs(1) - 1)
    def _():
        # Single cross-lane/sublane reduce per split (XLU), then one SMEM write.
        sse_ref[0, 0] = jnp.sum(acc_ref[...])


def duration_predictor_loss(outputs: jax.Array, targets: jax.Array) -> jax.Array:
    """MSE(outputs, log(targets + offset)), mean over all elements."""
    assert outputs.shape == targets.shape
    n = outputs.size  # true element count (static)

    out_flat = outputs.reshape(-1).astype(jnp.float32)
    tgt_flat = targets.reshape(-1).astype(jnp.float32)

    # Lane/sublane-dense layout: (rows, LANES) with rows a multiple of 8.
    rows = pl.cdiv(n, LANES)
    rows = ((rows + 7) // 8) * 8
    rows_per_tile = min(MAX_ROWS_PER_TILE, rows)
    num_tiles = pl.cdiv(rows, rows_per_tile)

    # v7x: split the reduction across both TensorCores when there is enough
    # work; on 1-TC chips (v5e/v6e) the split just runs sequentially.
    splits = 2 if num_tiles >= 2 else 1
    tiles_per_split = pl.cdiv(num_tiles, splits)
    num_tiles = splits * tiles_per_split
    rows = num_tiles * rows_per_tile

    padded = rows * LANES
    pad = padded - n
    if pad:
        # Padded positions must contribute exactly zero squared error:
        #   target pad 0.0          -> log(0 + offset) = log(offset)
        #   output pad log(offset)  -> diff == 0
        out_flat = jnp.pad(out_flat, (0, pad), constant_values=math.log(OFFSET))
        tgt_flat = jnp.pad(tgt_flat, (0, pad), constant_values=0.0)

    out2d = out_flat.reshape(rows, LANES)
    tgt2d = tgt_flat.reshape(rows, LANES)

    partials = pl.pallas_call(
        _dp_loss_kernel,
        out_shape=jax.ShapeDtypeStruct((splits, 1), jnp.float32),
        grid_spec=pltpu.PrefetchScalarGridSpec(
            num_scalar_prefetch=0,
            grid=(splits, tiles_per_split),
            in_specs=[
                pl.BlockSpec((rows_per_tile, LANES),
                             lambda c, i: (c * tiles_per_split + i, 0)),
                pl.BlockSpec((rows_per_tile, LANES),
                             lambda c, i: (c * tiles_per_split + i, 0)),
            ],
            out_specs=pl.BlockSpec((1, 1), lambda c, i: (c, 0),
                                   memory_space=pltpu.SMEM),
            scratch_shapes=[pltpu.VMEM((rows_per_tile, LANES), jnp.float32)],
        ),
        compiler_params=pltpu.CompilerParams(
            dimension_semantics=("parallel", "arbitrary"),
        ),
    )(out2d, tgt2d)

    return jnp.sum(partials) / jnp.float32(n)


def _reference(outputs, targets):
    return jnp.mean((outputs.astype(jnp.float32)
                     - jnp.log(targets.astype(jnp.float32) + OFFSET)) ** 2)


if __name__ == "__main__":
    key = jax.random.PRNGKey(0)
    k_out, k_tgt = jax.random.split(key)

    # Small (B, T) duration-predictor shapes.
    B, T = 2, 256
    outputs = jax.random.normal(k_out, (B, T), dtype=jnp.float32)
    targets = jax.random.uniform(k_tgt, (B, T), dtype=jnp.float32,
                                 minval=0.0, maxval=20.0)

    loss = jax.block_until_ready(duration_predictor_loss(outputs, targets))
    ref = _reference(outputs, targets)
    assert jnp.allclose(loss, ref, rtol=1e-5, atol=1e-5), (loss, ref)

    # Second check: ragged length exercising padding, multi-tile, and the
    # 2-way (dual-TensorCore) split path.
    k2o, k2t = jax.random.split(jax.random.PRNGKey(1))
    B2, T2 = 3, 100001
    outputs2 = jax.random.normal(k2o, (B2, T2), dtype=jnp.float32)
    targets2 = jax.random.uniform(k2t, (B2, T2), dtype=jnp.float32,
                                  minval=0.0, maxval=20.0)
    loss2 = jax.block_until_ready(duration_predictor_loss(outputs2, targets2))
    ref2 = _reference(outputs2, targets2)
    assert jnp.allclose(loss2, ref2, rtol=1e-4, atol=1e-5), (loss2, ref2)

    print("KERNEL_OK")
</pallas_src>

<mosaic_0001>
module attributes {stable_mosaic.version = 11 : i64} {
  func.func @_dp_loss_kernel(%arg0: i32, %arg1: i32, %arg2: memref<8x512xf32, #tpu.memory_space<vmem>>, %arg3: memref<8x512xf32, #tpu.memory_space<vmem>>, %arg4: memref<1x1xf32, #tpu.memory_space<smem>>, %arg5: memref<8x512xf32, #tpu.memory_space<vmem>>) attributes {dimension_semantics = [#tpu.dimension_semantics<parallel>, #tpu.dimension_semantics<arbitrary>], iteration_bounds = array<i64: 1, 1>, scalar_prefetch = 0 : i64, scratch_operands = 1 : i64, tpu.core_type = #tpu.core_type<tc>, window_params = [{transform_indices = @transform_0, window_bounds = array<i64: 8, 512>}, {transform_indices = @transform_1, window_bounds = array<i64: 8, 512>}, {transform_indices = @transform_2, window_bounds = array<i64: 1, 1>}]} {
    %c0_i32 = arith.constant 0 : i32
    %0 = arith.cmpi eq, %arg1, %c0_i32 : i32
    %1 = arith.extui %0 : i1 to i32
    %c0_i32_0 = arith.constant 0 : i32
    %2 = arith.cmpi ne, %1, %c0_i32_0 : i32
    scf.if %2 {
      %cst_10 = arith.constant 0.000000e+00 : f32
      %16 = vector.broadcast %cst_10 : f32 to vector<8x512xf32>
      %c0_11 = arith.constant 0 : index
      %c0_12 = arith.constant 0 : index
      %17 = vector.load %arg5[%c0_11, %c0_12] : memref<8x512xf32, #tpu.memory_space<vmem>>, vector<8x512xf32>
      tpu.vector_store %arg5[%c0_11, %c0_12], %16 {strides = array<i32>} : memref<8x512xf32, #tpu.memory_space<vmem>>, vector<8x512xf32>,
    } else {
    }
    %c0 = arith.constant 0 : index
    %c0_1 = arith.constant 0 : index
    %3 = vector.load %arg3[%c0, %c0_1] : memref<8x512xf32, #tpu.memory_space<vmem>>, vector<8x512xf32>
    %cst = arith.constant 1.000000e+00 : f32
    %4 = vector.broadcast %cst : f32 to vector<8x512xf32>
    %5 = arith.addf %3, %4 : vector<8x512xf32>
    %6 = math.log %5 : vector<8x512xf32>
    %c0_2 = arith.constant 0 : index
    %c0_3 = arith.constant 0 : index
    %7 = vector.load %arg2[%c0_2, %c0_3] : memref<8x512xf32, #tpu.memory_space<vmem>>, vector<8x512xf32>
    %8 = arith.subf %7, %6 : vector<8x512xf32>
    %c0_4 = arith.constant 0 : index
    %c0_5 = arith.constant 0 : index
    %9 = vector.load %arg5[%c0_4, %c0_5] : memref<8x512xf32, #tpu.memory_space<vmem>>, vector<8x512xf32>
    %10 = arith.mulf %8, %8 : vector<8x512xf32>
    %11 = arith.addf %9, %10 : vector<8x512xf32>
    %c0_6 = arith.constant 0 : index
    %c0_7 = arith.constant 0 : index
    %12 = vector.load %arg5[%c0_6, %c0_7] : memref<8x512xf32, #tpu.memory_space<vmem>>, vector<8x512xf32>
    tpu.vector_store %arg5[%c0_6, %c0_7], %11 {strides = array<i32>} : memref<8x512xf32, #tpu.memory_space<vmem>>, vector<8x512xf32>,
    %c0_i32_8 = arith.constant 0 : i32
    %13 = arith.cmpi eq, %arg1, %c0_i32_8 : i32
    %14 = arith.extui %13 : i1 to i32
    %c0_i32_9 = arith.constant 0 : i32
    %15 = arith.cmpi ne, %14, %c0_i32_9 : i32
    scf.if %15 {
      %c0_10 = arith.constant 0 : index
      %c0_11 = arith.constant 0 : index
      %16 = vector.load %arg5[%c0_10, %c0_11] : memref<8x512xf32, #tpu.memory_space<vmem>>, vector<8x512xf32>
      %17 = vector.shape_cast %16 : vector<8x512xf32> to vector<1x8x512xf32>
      %cst_12 = arith.constant dense<0.000000e+00> : vector<1xf32>
      %18 = vector.multi_reduction <add>, %17, %cst_12 [1, 2] : vector<1x8x512xf32> to vector<1xf32>
      %19 = vector.shape_cast %18 : vector<1xf32> to vector<1x1x1xf32>
      %20 = vector.extract %19[0, 0, 0] : f32 from vector<1x1x1xf32>
      %c0_13 = arith.constant 0 : index
      %c0_14 = arith.constant 0 : index
      %21 = memref.load %arg4[%c0_13, %c0_14] : memref<1x1xf32, #tpu.memory_space<smem>>
      memref.store %20, %arg4[%c0_13, %c0_14] : memref<1x1xf32, #tpu.memory_space<smem>>
    } else {
    }
    return
  }
  func.func @transform_0(%arg0: i32, %arg1: i32) -> (i32, i32) {
    %c1_i32 = arith.constant 1 : i32
    %0 = arith.muli %arg0, %c1_i32 : i32
    %1 = arith.addi %0, %arg1 : i32
    %c0_i32 = arith.constant 0 : i32
    %c0_i32_0 = arith.constant 0 : i32
    return %1, %c0_i32 : i32, i32
  }
  func.func @transform_1(%arg0: i32, %arg1: i32) -> (i32, i32) {
    %c1_i32 = arith.constant 1 : i32
    %0 = arith.muli %arg0, %c1_i32 : i32
    %1 = arith.addi %0, %arg1 : i32
    %c0_i32 = arith.constant 0 : i32
    %c0_i32_0 = arith.constant 0 : i32
    return %1, %c0_i32 : i32, i32
  }
  func.func @transform_2(%arg0: i32, %arg1: i32) -> (i32, i32) {
    %c0_i32 = arith.constant 0 : i32
    %c0_i32_0 = arith.constant 0 : i32
    return %arg0, %c0_i32 : i32, i32
  }
}

</mosaic_0001>

<bundles_post_ra>
// kernel: tpu_custom_call.1
= control target key start
LH: loop header
LB: loop body
LE: loop exit
PB: predicated region body
PF: predicated region fallthrough
CT: control target
= control target key end

     0   :  { %7 = vsyncpa [#allocation4], 0  ;;  %s257_s0 = inlined_call_operand.hbm [shape: f32[8,512], index: 0, kind: input, shape index: {}]   ;;  %s258_s1 = inlined_call_operand.hbm [shape: f32[8,512], index: 1, kind: input, shape index: {}]   ;;  %s259_s2 = inlined_call_operand.hbm [shape: f32[1,1], index: 2, kind: output, shape index: {}]  }
   0x1   :  { %8 = vsyncpa [#allocation7], 0 }
   0x2   :  { %9 = vsyncpa [#allocation5], 0  ;;  %s203_s9 = smov [#allocation3]   ;;  %s204_s11 = smov [#allocation6]  }
   0x3   :  { %s20_s10 = sshll.u32 %s203_s9, 4  ;;  %s34_s12 = sshll.u32 %s204_s11, 4  ;;  %s21_s10 = int_to_ptr.vmem [resolvable:$true] %s20_s10  ;;  %s35_s12 = int_to_ptr.vmem [resolvable:$true] %s34_s12 }
   0x4   :  { %s143_s15 = scalar_lea.hbm %s257_s0, 512 }
   0x5   :  { %p144_p0 = scmp.ne.s32.totalorder %s257_s0, %s143_s15  ;;  %p147_p1 = scmp.lt.u32.totalorder %s143_s15, %s257_s0 }
   0x7   :  { %p149_p2 = pnand %p147_p1, %p144_p0 }
   0x9   :  { %152 = shalt.err (!%p149_p2)
}
   0xa   :  { %s153_s20 = scalar_lea.vmem %s21_s10, 512  ;;  %p158_p4 = scmp.lt.s32.totalorder %s21_s10, %s21_s10 }
   0xb   :  { %p154_p3 = scmp.ne.s32.totalorder %s21_s10, %s153_s20  ;;  %p159_p5 = scmp.lt.s32.totalorder %s153_s20, %s153_s20 }
   0xd   :  { %p160_p6 = por %p159_p5, %p158_p4 }
   0xf   :  { %p161_p7 = pnand %p160_p6, %p154_p3 }
  0x11   :  { %164 = shalt.err (!%p161_p7)
}
  0x12   :  { %23 = dma.hbm_to_vmem [thread:$0]  %s257_s0, 512, %s21_s10, [#allocation4]  }
  0x13   :  { %s165_s25 = scalar_lea.hbm %s258_s1, 512 }
  0x14   :  { %p166_p8 = scmp.ne.s32.totalorder %s258_s1, %s165_s25  ;;  %p169_p9 = scmp.lt.u32.totalorder %s165_s25, %s258_s1 }
  0x16   :  { %p171_p10 = pnand %p169_p9, %p166_p8 }
  0x18   :  { %174 = shalt.err (!%p171_p10)
}
  0x19   :  { %s175_s30 = scalar_lea.vmem %s35_s12, 512  ;;  %p180_p12 = scmp.lt.s32.totalorder %s35_s12, %s35_s12 }
  0x1a   :  { %p176_p11 = scmp.ne.s32.totalorder %s35_s12, %s175_s30  ;;  %p181_p13 = scmp.lt.s32.totalorder %s175_s30, %s175_s30 }
  0x1c   :  { %p182_p0 = por %p181_p13, %p180_p12 }
  0x1e   :  { %p183_p1 = pnand %p182_p0, %p176_p11 }
  0x20   :  { %186 = shalt.err (!%p183_p1)
}
  0x21   :  { %37 = dma.hbm_to_vmem [thread:$0]  %s258_s1, 512, %s35_s12, [#allocation7]  }
  0x22   :  { %197 = dma.done.wait [#allocation4], 512  }
  0x23   :  { %198 = vsyncadd [#allocation4], 4294966784 }
  0x24   :  { %199 = dma.done.wait [#allocation7], 512  }
  0x25   :  { %200 = vsyncadd [#allocation7], 4294966784  ;;  %v54_v0 = vld [vmem:[#allocation6] sm:$0xff]  ;;  %v55_v1 = vld [vmem:[#allocation6 + $0x8] sm:$0xff]  ;;  %s187_s6 = scalar_lea.hbm %s259_s2, 16 }
  0x26   :  { %v56_v2 = vld [vmem:[#allocation6 + $0x10] sm:$0xff]  ;;  %v57_v3 = vld [vmem:[#allocation6 + $0x18] sm:$0xff]  ;;  %v58_v4 = vadd.f32 1.0, %v54_v0  ;;  %v59_v5 = vadd.f32 1.0, %v55_v1  ;;  %v70_v9 = vld [vmem:[#allocation3] sm:$0xff]  ;;  %p188_p2 = scmp.ne.s32.totalorder %s259_s2, %s187_s6  ;;  %p191_p3 = scmp.lt.u32.totalorder %s187_s6, %s259_s2 }
  0x27   :  { %v60_v6 = vadd.f32 1.0, %v56_v2  ;;  %v61_v7 = vadd.f32 1.0, %v57_v3  ;;  %v71_v12 = vld [vmem:[#allocation3 + $0x8] sm:$0xff]  ;;  %v72_v15 = vld [vmem:[#allocation3 + $0x10] sm:$0xff]  ;;  %v73_v18 = vld [vmem:[#allocation3 + $0x18] sm:$0xff] }
  0x28   :  { %135 = vlog2.f32 %v58_v4  ;;  %p193_p4 = pnand %p191_p3, %p188_p2 }
  0x29   :  { %137 = vlog2.f32 %v59_v5 }
  0x2a   :  { %139 = vlog2.f32 %v60_v6 }
  0x2b   :  { %141 = vlog2.f32 %v61_v7 }
  0x32   :  { %v136_v8 = vpop.eup %135 }
  0x33   :  { %v138_v10 = vpop.eup %137  ;;  %v63_v11 = vmul.f32 0.6931472, %v136_v8 }
  0x34   :  { %v140_v13 = vpop.eup %139  ;;  %v65_v14 = vmul.f32 0.6931472, %v138_v10 }
  0x35   :  { %v142_v16 = vpop.eup %141  ;;  %v67_v17 = vmul.f32 0.6931472, %v140_v13  ;;  %v74_v19 = vsub.f32 %v70_v9, %v63_v11 }
  0x36   :  { %v69_v20 = vmul.f32 0.6931472, %v142_v16  ;;  %v75_v21 = vsub.f32 %v71_v12, %v65_v14 }
  0x37   :  { %v76_v22 = vsub.f32 %v72_v15, %v67_v17  ;;  %v82_v23 = vmul.f32 %v74_v19, %v74_v19 }
  0x38   :  { %v77_v24 = vsub.f32 %v73_v18, %v69_v20  ;;  %v83_v25 = vmul.f32 %v75_v21, %v75_v21 }
  0x39   :  { %v84_v26 = vmul.f32 %v76_v22, %v76_v22 }
  0x3a   :  { %v85_v27 = vmul.f32 %v77_v24, %v77_v24  ;;  %v101_v28 = vadd.f32 %v83_v25, %v82_v23 }
  0x3c   :  { %v102_v29 = vadd.f32 %v101_v28, %v84_v26 }
  0x3e   :  { %v103_v30 = vadd.f32 %v102_v29, %v85_v27 }
  0x40   :  { %104 = vadd.xlane.f32.xlu0 %v103_v30 }
  0xcd   :  { %v105_v31 = vpop.xlane.xlu0 %104 }
  0xce   :  { %v106_v32 = vrot.slane %v105_v31, 4 }
  0xd0   :  { %v107_v33 = vadd.f32 %v106_v32, %v105_v31 }
  0xd2   :  { %v108_v34 = vrot.slane %v107_v33, 2 }
  0xd4   :  { %v109_v35 = vadd.f32 %v108_v34, %v107_v33 }
  0xd6   :  { %v110_v36 = vrot.slane %v109_v35, 1 }
  0xd8   :  { %v111_v37 = vadd.f32 %v110_v36, %v109_v35 }
  0xda   :  { %130 = vpush %v111_v37 }
 0x10b   :  { %s131_s1 = spop %130 }
 0x10c   :  { %114 = sst [smem:[#allocation8]] %s131_s1 }
 0x10d   :  { %196 = shalt.err (!%p193_p4)
}
 0x10e   :  { %s205_s11 = smov [#allocation8]  }
 0x10f   :  { %122 = dma.smem_to_hbm %s205_s11, 16, %s259_s2, [#allocation5]  }
 0x110   :  { %201 = dma.done.wait [#allocation5], 16  }
 0x111   :  { %202 = vsyncadd [#allocation5], 4294967280 }
 0x112   :  { %126 = sfence }
 0x113   :  { %127 = vsyncpa [#allocation4], 1 }
 0x114   :  { %128 = vsyncpa [#allocation7], 1 }
 0x115   :  { %129 = vsyncpa [#allocation5], 1 }

</bundles_post_ra>
